<compile_context>
chip_gen: v7x
topology: tpu7x:2x2x1
jax: 0.10.0
libtpu: 0.0.40
codegen_flags: <defaults>
</compile_context>

<pallas_src>
import jax
import jax.numpy as jnp
from jax import lax
from jax.experimental import pallas as pl
from jax.experimental.pallas import tpu as pltpu


_LANE = 128
_VMEM_BUDGET = 48 * 1024 * 1024   # working-set budget; keeps headroom under v7x's 64 MiB


def _round_up(x, m):
    return (x + m - 1) // m * m


def _quat_kernel(feat_ref, w_ref, b_ref, out_ref):
    # feat_ref: (TB, D) native dtype; w_ref: (D, R) f32; b_ref: (1, R) f32;
    # out_ref: (TB, R) f32  OR lane-dense (TB*R/128, 128) f32 (same bytes, row-major).
    feat = feat_ref[...].astype(jnp.float32)   # cast in VMEM; HBM stream stays native dtype
    q = jnp.dot(feat, w_ref[...], preferred_element_type=jnp.float32) + b_ref[...]
    # torch F.normalize(p=2, dim=1, eps=1e-12): clamp norm at 1e-12 == clamp sumsq at
    # 1e-24; one rsqrt (EUP slot) + one multiply.
    sumsq = jnp.sum(q * q, axis=-1, keepdims=True)
    inv = lax.rsqrt(jnp.maximum(sumsq, 1e-24))
    out_ref[...] = (q * inv).astype(out_ref.dtype).reshape(out_ref.shape)


def _vmem_bytes(tb, d, r, feat_itemsize, lane_dense):
    """Approximate double-buffered VMEM working set (lane-padded)."""
    d_pad = max(_round_up(d, _LANE), _LANE)
    feat_buf = tb * d_pad * feat_itemsize
    if lane_dense:
        out_buf = (tb * r // _LANE) * _LANE * 4
    else:
        out_buf = tb * max(_round_up(r, _LANE), _LANE) * 4
    resident = 256 * 1024                      # weight/bias blocks + slack
    return 2 * (feat_buf + out_buf) + resident


def quat_predictor(feat, weight, bias, *, block_b=32768):
    """QuatPredictor forward: Linear(nz_feat -> nz_rot) + L2 normalize along dim=1.

    feat:   (B, nz_feat)       f32 or bf16 (streamed in its native dtype)
    weight: (nz_rot, nz_feat)  PyTorch nn.Linear layout
    bias:   (nz_rot,)
    returns (B, nz_rot) float32
    """
    B, D = feat.shape
    R, D_w = weight.shape
    assert D == D_w, "weight must be (nz_rot, nz_feat)"
    assert bias.shape == (R,)
    f32 = jnp.float32

    # One-time tiny param prep outside the kernel (D*R elements).
    w_t = jnp.transpose(jnp.asarray(weight, f32))        # (D, R): (K, N) MXU orientation
    b2 = jnp.asarray(bias, f32).reshape(1, R)

    # ---- batch-tile selection -------------------------------------------------------
    if B <= 2048:
        tb = B                                           # single full-dim block
    else:
        # >= 2 grid steps so a v7x megacore can split the batch; 512-row granularity
        # keeps every block (8,128)/(16,128)-legal and keeps tb % 32 == 0.
        tb = min(block_b, _round_up(pl.cdiv(B, 2), 512))

    # Lane-dense output layout is bit-identical to (B, R) row-major when B*R % 128 == 0.
    lane_dense = (B * R) % _LANE == 0 and (tb * R) % _LANE == 0
    if not lane_dense and B > 2048:
        tb = min(tb, 8192)                               # padded (tb,R)->(tb,128) out is costly

    feat_itemsize = jnp.dtype(feat.dtype).itemsize
    while tb > 512 and _vmem_bytes(tb, D, R, feat_itemsize, lane_dense) > _VMEM_BUDGET:
        tb = max(512, _round_up(tb // 2, 512))

    grid = (pl.cdiv(B, tb),)

    if lane_dense:
        out_shape = jax.ShapeDtypeStruct((B * R // _LANE, _LANE), f32)
        out_spec = pl.BlockSpec((tb * R // _LANE, _LANE), lambda i: (i, 0))
    else:
        out_shape = jax.ShapeDtypeStruct((B, R), f32)
        out_spec = pl.BlockSpec((tb, R), lambda i: (i, 0))

    cost = pl.CostEstimate(
        flops=2 * B * D * R + 5 * B * R,
        transcendentals=B,                               # one rsqrt per row
        bytes_accessed=B * D * feat_itemsize + (D * R + R) * 4 + B * R * 4,
    )

    est = _vmem_bytes(tb, D, R, feat_itemsize, lane_dense)
    vmem_limit = int(min(max(est + (16 << 20), 32 << 20), 56 << 20))

    out = pl.pallas_call(
        _quat_kernel,
        out_shape=out_shape,
        grid=grid,
        in_specs=[
            pl.BlockSpec((tb, D), lambda i: (i, 0)),     # feat: streamed batch tiles
            pl.BlockSpec((D, R), lambda i: (0, 0)),      # weight: VMEM-resident
            pl.BlockSpec((1, R), lambda i: (0, 0)),      # bias: VMEM-resident
        ],
        out_specs=out_spec,
        compiler_params=pltpu.CompilerParams(
            dimension_semantics=("parallel",),           # megacore batch split (v7x)
            vmem_limit_bytes=vmem_limit,
        ),
        cost_estimate=cost,
    )(feat, w_t, b2)

    if lane_dense:
        out = out.reshape(B, R)                          # free row-major re-view
    return out


if __name__ == "__main__":
    NZ_FEAT, NZ_ROT = 32, 4

    def reference(feat, weight, bias):
        q = feat.astype(jnp.float32) @ weight.T.astype(jnp.float32) + bias.astype(jnp.float32)
        n = jnp.maximum(jnp.linalg.norm(q, axis=-1, keepdims=True), 1e-12)
        return q / n

    key = jax.random.PRNGKey(0)
    k_w, k_b, k_f = jax.random.split(key, 3)
    bound = 1.0 / (NZ_FEAT ** 0.5)
    weight = jax.random.uniform(k_w, (NZ_ROT, NZ_FEAT), minval=-bound, maxval=bound,
                                dtype=jnp.float32)
    bias = jax.random.uniform(k_b, (NZ_ROT,), minval=-bound, maxval=bound,
                              dtype=jnp.float32)

    # 1) Module-scale check (batch=2): direct (B, 4) output path, single grid step.
    feat_small = jax.random.normal(k_f, (2, NZ_FEAT), dtype=jnp.float32)
    out_small = jax.block_until_ready(quat_predictor(feat_small, weight, bias))
    ref_small = reference(feat_small, weight, bias)
    assert out_small.shape == (2, NZ_ROT)
    assert jnp.allclose(out_small, ref_small, atol=1e-5, rtol=1e-5)

    # 2) Larger batch: lane-dense output layout, >= 2 grid steps, partial final tile.
    feat_big = jax.random.normal(jax.random.fold_in(k_f, 1), (4256, NZ_FEAT),
                                 dtype=jnp.float32)
    out_big = jax.block_until_ready(quat_predictor(feat_big, weight, bias))
    ref_big = reference(feat_big, weight, bias)
    assert out_big.shape == (4256, NZ_ROT)
    assert jnp.allclose(out_big, ref_big, atol=1e-5, rtol=1e-5)

    # 3) bf16 feat streamed in its native dtype (no wrapper up-cast); math stays f32.
    feat_bf = feat_big.astype(jnp.bfloat16)
    out_bf = jax.block_until_ready(quat_predictor(feat_bf, weight, bias))
    ref_bf = reference(feat_bf, weight, bias)
    assert jnp.allclose(out_bf, ref_bf, atol=1e-5, rtol=1e-5)

    print("KERNEL_OK")
</pallas_src>

<mosaic_0001>
module attributes {stable_mosaic.version = 11 : i64} {
  func.func @_quat_kernel(%arg0: i32, %arg1: memref<2x32xf32, #tpu.memory_space<vmem>>, %arg2: memref<32x4xf32, #tpu.memory_space<vmem>>, %arg3: memref<1x4xf32, #tpu.memory_space<vmem>>, %arg4: memref<2x4xf32, #tpu.memory_space<vmem>>) attributes {dimension_semantics = [#tpu.dimension_semantics<parallel>], iteration_bounds = array<i64: 1>, scalar_prefetch = 0 : i64, scratch_operands = 0 : i64, tpu.core_type = #tpu.core_type<tc>, window_params = [{transform_indices = @transform_0, window_bounds = array<i64: 2, 32>}, {pipeline_mode = #tpu.pipeline_mode<synchronous>, transform_indices = @transform_1, window_bounds = array<i64: 32, 4>}, {pipeline_mode = #tpu.pipeline_mode<synchronous>, transform_indices = @transform_2, window_bounds = array<i64: 1, 4>}, {transform_indices = @transform_3, window_bounds = array<i64: 2, 4>}]} {
    %c0 = arith.constant 0 : index
    %c0_0 = arith.constant 0 : index
    %0 = vector.load %arg1[%c0, %c0_0] : memref<2x32xf32, #tpu.memory_space<vmem>>, vector<2x32xf32>
    %c0_1 = arith.constant 0 : index
    %c0_2 = arith.constant 0 : index
    %1 = vector.load %arg2[%c0_1, %c0_2] : memref<32x4xf32, #tpu.memory_space<vmem>>, vector<32x4xf32>
    %cst = arith.constant dense<0.000000e+00> : vector<2x4xf32>
    %2 = tpu.matmul %0, %1, %cst {dimension_numbers = #tpu.dot_dimension_numbers<[1], [0], [0], [1], [0, 0, 1, 1], [], []>} : vector<2x32xf32>, vector<32x4xf32>, vector<2x4xf32> -> vector<2x4xf32>
    %c0_3 = arith.constant 0 : index
    %c0_4 = arith.constant 0 : index
    %3 = vector.load %arg3[%c0_3, %c0_4] : memref<1x4xf32, #tpu.memory_space<vmem>>, vector<1x4xf32>
    %4 = vector.broadcast %3 : vector<1x4xf32> to vector<2x4xf32>
    %5 = arith.addf %2, %4 : vector<2x4xf32>
    %6 = arith.mulf %5, %5 : vector<2x4xf32>
    %cst_5 = arith.constant dense<0.000000e+00> : vector<2xf32>
    %7 = vector.multi_reduction <add>, %6, %cst_5 [1] : vector<2x4xf32> to vector<2xf32>
    %8 = vector.shape_cast %7 : vector<2xf32> to vector<2x1xf32>
    %cst_6 = arith.constant 1.000000e-24 : f32
    %9 = vector.broadcast %cst_6 : f32 to vector<2x1xf32>
    %10 = arith.maximumf %8, %9 : vector<2x1xf32>
    %11 = math.rsqrt %10 : vector<2x1xf32>
    %12 = vector.broadcast %11 : vector<2x1xf32> to vector<2x4xf32>
    %13 = arith.mulf %5, %12 : vector<2x4xf32>
    %c0_7 = arith.constant 0 : index
    %c0_8 = arith.constant 0 : index
    %14 = vector.load %arg4[%c0_7, %c0_8] : memref<2x4xf32, #tpu.memory_space<vmem>>, vector<2x4xf32>
    tpu.vector_store %arg4[%c0_7, %c0_8], %13 {strides = array<i32>} : memref<2x4xf32, #tpu.memory_space<vmem>>, vector<2x4xf32>,
    return
  }
  func.func @transform_0(%arg0: i32) -> (i32, i32) {
    %c0_i32 = arith.constant 0 : i32
    %c0_i32_0 = arith.constant 0 : i32
    return %arg0, %c0_i32 : i32, i32
  }
  func.func @transform_1(%arg0: i32) -> (i32, i32) {
    %c0_i32 = arith.constant 0 : i32
    %c0_i32_0 = arith.constant 0 : i32
    %c0_i32_1 = arith.constant 0 : i32
    return %c0_i32, %c0_i32_0 : i32, i32
  }
  func.func @transform_2(%arg0: i32) -> (i32, i32) {
    %c0_i32 = arith.constant 0 : i32
    %c0_i32_0 = arith.constant 0 : i32
    %c0_i32_1 = arith.constant 0 : i32
    return %c0_i32, %c0_i32_0 : i32, i32
  }
  func.func @transform_3(%arg0: i32) -> (i32, i32) {
    %c0_i32 = arith.constant 0 : i32
    %c0_i32_0 = arith.constant 0 : i32
    return %arg0, %c0_i32 : i32, i32
  }
}

</mosaic_0001>

<bundles_post_ra>
// kernel: tpu_custom_call.1
= control target key start
LH: loop header
LB: loop body
LE: loop exit
PB: predicated region body
PF: predicated region fallthrough
CT: control target
= control target key end

     0   :  { %v178_v3 = vmov 0.0|0.0   ;;  %vm179_vm0 = vmmov 0   ;;  %v180_v6 = vmov 0.0   ;;  %s232_s0 = inlined_call_operand.vmem [shape: f32[2,32], index: 0, kind: input, shape index: {}]   ;;  %s233_s1 = inlined_call_operand.vmem [shape: f32[32,4], index: 1, kind: input, shape index: {}]   ;;  %s234_s2 = inlined_call_operand.vmem [shape: f32[1,4], index: 2, kind: input, shape index: {}]   ;;  %s235_s3 = inlined_call_operand.hbm [shape: f32[2,4], index: 3, kind: output, shape index: {}]  }
   0x1   :  { %v16_v0 = vld [vmem:[%s233_s1] sm:$0xff]  ;;  %v17_v1 = vld [vmem:[%s233_s1 + $0x8] sm:$0xff]  ;;  %v18_v2 = vld [vmem:[%s233_s1 + $0x10] sm:$0xff]  ;;  %142 = vmatprep.subr.bf16.mxu0 %v178_v3  ;;  %139 = vmatprep.mubr.msk.f32.mxu0 %vm179_vm0, %v180_v6 }
   0x2   :  { %v143_v4 = vpack.c.bf16 %v17_v1, %v16_v0  ;;  %v19_v5 = vld [vmem:[%s233_s1 + $0x18] sm:$0xff] }
   0x3   :  { %8 = vsyncpa [#allocation3], 0  ;;  %v146_v7 = vpack.c.bf16 %v19_v5, %v18_v2  ;;  %v15_v8 = vld [vmem:[%s232_s0] sm:$0x3]  ;;  %vm27_vm1 = vcmask 261120   ;;  %vm102_vm2 = vcmask 25600  }
   0x4   :  { %144 = vmatpush3.bf16.msra.mxu0 %v143_v4  ;;  %v124_v9 = vld [vmem:[%s234_s2] ss:$0 sm:$0xff]  ;;  %s181_s1 = smov [#allocation2]  }
   0x5   :  { %145 = vmatprep.subr.bf16.mxu0 %v178_v3  ;;  %s116_s24 = sshll.u32 %s181_s1, 4  ;;  %s117_s24 = int_to_ptr.vmem [resolvable:$true] %s116_s24 }
   0x6   :  { %s154_s0 = scalar_lea.vmem %s117_s24, 32  ;;  %p159_p1 = scmp.lt.s32.totalorder %s117_s24, %s117_s24 }
   0x7   :  { %p155_p0 = scmp.ne.s32.totalorder %s117_s24, %s154_s0  ;;  %p160_p2 = scmp.lt.s32.totalorder %s154_s0, %s154_s0 }
   0x8   :  { %147 = vmatpush3.bf16.msra.mxu0 %v146_v7 }
   0x9   :  { %p161_p3 = por %p160_p2, %p159_p1 }
   0xb   :  { %140 = vmatmul.mubr.msk.f32.vlgmr.msra.gmra.mrb[0].mxu0 %vm27_vm1, %v15_v8  ;;  %p162_p4 = pnand %p161_p3, %p155_p0 }
  0xde   :  { %v97_v10 = vpop.f32.mrb[0].mxu0 }
  0xdf   :  { %v98_v11 = vadd.f32 %v124_v9, %v97_v10  ;;  %v141_v12 = vpop.f32.mrb[1].mxu0 }
  0xe1   :  { %v101_v13 = vmul.f32 %v98_v11, %v98_v11 }
  0xe3   :  { %v103_v14 = vsel %vm102_vm2, %v101_v13, 0.0 }
  0xe4   :  { %104 = vadd.xlane.f32.xlu0 %v103_v14 }
 0x171   :  { %v105_v15 = vpop.xlane.xlu0 %104 }
 0x172   :  { %v106_v16 = vmax.f32 %v105_v15, 1e-24 }
 0x174   :  { %152 = vrsqrt.f32 %v106_v16 }
 0x17e   :  { %v153_v17 = vpop.eup %152 }
 0x17f   :  { %v108_v18 = vmul.f32 %v153_v17, %v98_v11 }
 0x181   :  { %109 = vst.msk [vmem:[#allocation2] sm:$0x3] %vm102_vm2, %v108_v18 }
 0x182   :  { %165 = shalt.err (!%p162_p4)
}
 0x183   :  { %s166_s26 = scalar_lea.hbm %s235_s3, 32 }
 0x184   :  { %p167_p5 = scmp.ne.s32.totalorder %s235_s3, %s166_s26  ;;  %p170_p6 = scmp.lt.u32.totalorder %s166_s26, %s235_s3 }
 0x186   :  { %p172_p7 = pnand %p170_p6, %p167_p5 }
 0x188   :  { %175 = shalt.err (!%p172_p7)
}
 0x189   :  { %119 = dma.vmem_to_hbm [thread:$0]  %s117_s24, 32, %s235_s3, [#allocation3]  }
 0x18a   :  { %176 = dma.done.wait [#allocation3], 32  }
 0x18b   :  { %177 = vsyncadd [#allocation3], 4294967264 }
 0x18c   :  { %123 = vsyncpa [#allocation3], 1 }

</bundles_post_ra>
